<compile_context>
chip_gen: v5e
topology: v5e:2x2
jax: 0.10.0
libtpu: 0.0.40
codegen_flags: <defaults>
</compile_context>

<pallas_src>
import functools

import jax
import jax.numpy as jnp
from jax.experimental import pallas as pl
from jax.experimental.pallas import tpu as pltpu


def dino_head_kernel(x_ref, w1_ref, b1_ref, w2_ref, b2_ref, w3_ref, b3_ref,
                     wl_ref, out_ref, z_ref):
    """Grid = (batch_tiles, out_tiles); out_tiles is the inner (fast) axis."""

    # --- MLP + L2 normalize: compute once per batch tile (j == 0 only) ------
    @pl.when(pl.program_id(1) == 0)
    def _compute_z():
        h = jnp.dot(x_ref[...].astype(jnp.bfloat16), w1_ref[...],
                    preferred_element_type=jnp.float32) + b1_ref[...]
        h = jnp.maximum(h, 0.0)
        h = jnp.dot(h.astype(jnp.bfloat16), w2_ref[...],
                    preferred_element_type=jnp.float32) + b2_ref[...]
        h = jnp.maximum(h, 0.0)
        z = jnp.dot(h.astype(jnp.bfloat16), w3_ref[...],
                    preferred_element_type=jnp.float32) + b3_ref[...]
        # torch F.normalize(dim=-1, p=2, eps=1e-12): z / max(||z||, 1e-12).
        # rsqrt goes to the EUP slot; reduction kept in f32.
        sumsq = jnp.sum(z * z, axis=-1, keepdims=True)
        z_ref[...] = z * jax.lax.rsqrt(jnp.maximum(sumsq, 1e-24))

    # --- weight-normalized last layer: streaming (bottleneck, TN) tiles -----
    out_ref[...] = jnp.dot(z_ref[...].astype(jnp.bfloat16), wl_ref[...],
                           preferred_element_type=jnp.float32
                           ).astype(out_ref.dtype)


def dino_head_forward(x, params, *, tm=None, tn=None):
    """x: (B, in_dim) float32. params: dict of pre-transposed weights (bf16)
    and f32 biases. Returns (B, out_dim) float32."""
    w1, b1, w2, b2, w3, b3, wlast = (
        params["w1"], params["b1"], params["w2"], params["b2"],
        params["w3"], params["b3"], params["wlast"])
    B, in_dim = x.shape
    hidden_dim = w1.shape[1]
    bottleneck_dim = w3.shape[1]
    out_dim = wlast.shape[1]

    # Tile sizes: batch tile multiple of 8 (sublane), out tile multiple of 128
    # (lane-dense stores) and large enough to amortize per-step overhead.
    if tm is None:
        tm = min(B, 128)
    if tn is None:
        tn = min(out_dim, 512)
    assert B % tm == 0, "batch must be divisible by the batch tile"
    assert out_dim % tn == 0, "out_dim must be divisible by the output tile"
    assert (tm % 8 == 0) or (tm == B)
    assert (tn % 128 == 0) or (tn == out_dim)

    grid = (B // tm, out_dim // tn)

    # Resident parameters (index_map independent of grid indices -> no
    # re-DMA between consecutive steps).
    def resident(arr):
        return pl.BlockSpec(arr.shape, lambda i, j: (0,) * arr.ndim)

    in_specs = [
        pl.BlockSpec((tm, in_dim), lambda i, j: (i, 0)),        # x: per batch tile
        resident(w1), resident(b1),
        resident(w2), resident(b2),
        resident(w3), resident(b3),
        pl.BlockSpec((bottleneck_dim, tn), lambda i, j: (0, j)),  # wlast: streamed
    ]
    out_specs = pl.BlockSpec((tm, tn), lambda i, j: (i, j))

    return pl.pallas_call(
        dino_head_kernel,
        out_shape=jax.ShapeDtypeStruct((B, out_dim), jnp.float32),
        grid_spec=pltpu.PrefetchScalarGridSpec(
            num_scalar_prefetch=0,
            grid=grid,
            in_specs=in_specs,
            out_specs=out_specs,
            scratch_shapes=[pltpu.VMEM((tm, bottleneck_dim), jnp.float32)],
        ),
        compiler_params=pltpu.CompilerParams(
            # batch tiles are independent (megacore-shardable); the out_dim
            # axis carries the z-scratch so it must stay "arbitrary".
            dimension_semantics=("parallel", "arbitrary"),
            vmem_limit_bytes=64 * 1024 * 1024,
        ),
    )(x, w1, b1, w2, b2, w3, b3, wlast)


def init_params(key, in_dim, out_dim, hidden_dim, bottleneck_dim):
    """Deterministic synthetic init mirroring DINOHead.__init__ shapes.

    Linear weights ~ trunc_normal(std=0.02), biases = 0, weight_norm last
    layer with weight_g = 1 (so effective weight is row-L2-normalized V).
    Weights are stored transposed (in_features, out_features) and cast to
    bf16 for the MXU; biases stay f32.
    """
    k1, k2, k3, k4 = jax.random.split(key, 4)

    def tn(k, shape, std=0.02):
        return std * jax.random.truncated_normal(k, -2.0, 2.0, shape, jnp.float32)

    w1 = tn(k1, (in_dim, hidden_dim)).astype(jnp.bfloat16)
    b1 = jnp.zeros((1, hidden_dim), jnp.float32)
    w2 = tn(k2, (hidden_dim, hidden_dim)).astype(jnp.bfloat16)
    b2 = jnp.zeros((1, hidden_dim), jnp.float32)
    w3 = tn(k3, (hidden_dim, bottleneck_dim)).astype(jnp.bfloat16)
    b3 = jnp.zeros((1, bottleneck_dim), jnp.float32)

    # nn.utils.weight_norm(Linear(bottleneck, out, bias=False)):
    # effective weight = g * v / ||v||_row, with g filled to 1.
    v = jax.random.normal(k4, (out_dim, bottleneck_dim), jnp.float32)  # torch (out,in)
    v_norm = jnp.sqrt(jnp.sum(v * v, axis=1, keepdims=True))
    w_eff = v / v_norm                                 # g = 1
    wlast = w_eff.T.astype(jnp.bfloat16)               # (bottleneck, out), bf16

    return dict(w1=w1, b1=b1, w2=w2, b2=b2, w3=w3, b3=b3, wlast=wlast)


def reference_forward(x, p):
    """Pure-JAX reference with the same bf16-operand / f32-accumulate casts."""
    dot = functools.partial(jnp.dot, preferred_element_type=jnp.float32)
    h = jnp.maximum(dot(x.astype(jnp.bfloat16), p["w1"]) + p["b1"], 0.0)
    h = jnp.maximum(dot(h.astype(jnp.bfloat16), p["w2"]) + p["b2"], 0.0)
    z = dot(h.astype(jnp.bfloat16), p["w3"]) + p["b3"]
    z = z / jnp.maximum(jnp.linalg.norm(z, axis=-1, keepdims=True), 1e-12)
    return dot(z.astype(jnp.bfloat16), p["wlast"])


if __name__ == "__main__":
    # Small shapes consistent with DINOHead(in_dim, out_dim, nlayers=3,
    # hidden_dim, bottleneck_dim); chosen so the grid is genuinely tiled
    # (2 batch tiles x 2 output tiles) while staying tiny.
    B, IN_DIM, HIDDEN, BOTTLENECK, OUT_DIM = 32, 128, 256, 128, 512
    TM, TN = 16, 256

    key = jax.random.PRNGKey(0)
    kx, kp = jax.random.split(key)
    x = jax.random.normal(kx, (B, IN_DIM), jnp.float32)
    params = init_params(kp, IN_DIM, OUT_DIM, HIDDEN, BOTTLENECK)

    out = dino_head_forward(x, params, tm=TM, tn=TN)
    out = jax.block_until_ready(out)

    ref = reference_forward(x, params)
    assert out.shape == (B, OUT_DIM)
    assert jnp.allclose(out, ref, atol=1e-3, rtol=1e-3), "mismatch vs JAX reference"

    print("KERNEL_OK")
</pallas_src>

<mosaic_0001>
module attributes {stable_mosaic.version = 11 : i64} {
  func.func @dino_head_kernel(%arg0: i32, %arg1: i32, %arg2: memref<16x128xf32, #tpu.memory_space<vmem>>, %arg3: memref<128x256xbf16, #tpu.memory_space<vmem>>, %arg4: memref<1x256xf32, #tpu.memory_space<vmem>>, %arg5: memref<256x256xbf16, #tpu.memory_space<vmem>>, %arg6: memref<1x256xf32, #tpu.memory_space<vmem>>, %arg7: memref<256x128xbf16, #tpu.memory_space<vmem>>, %arg8: memref<1x128xf32, #tpu.memory_space<vmem>>, %arg9: memref<128x256xbf16, #tpu.memory_space<vmem>>, %arg10: memref<16x256xf32, #tpu.memory_space<vmem>>, %arg11: memref<16x128xf32, #tpu.memory_space<vmem>>) attributes {dimension_semantics = [#tpu.dimension_semantics<parallel>, #tpu.dimension_semantics<arbitrary>], iteration_bounds = array<i64: 2, 2>, scalar_prefetch = 0 : i64, scratch_operands = 1 : i64, tpu.core_type = #tpu.core_type<tc>, window_params = [{transform_indices = @transform_0, window_bounds = array<i64: 16, 128>}, {pipeline_mode = #tpu.pipeline_mode<synchronous>, transform_indices = @transform_1, window_bounds = array<i64: 128, 256>}, {pipeline_mode = #tpu.pipeline_mode<synchronous>, transform_indices = @transform_2, window_bounds = array<i64: 1, 256>}, {pipeline_mode = #tpu.pipeline_mode<synchronous>, transform_indices = @transform_3, window_bounds = array<i64: 256, 256>}, {pipeline_mode = #tpu.pipeline_mode<synchronous>, transform_indices = @transform_4, window_bounds = array<i64: 1, 256>}, {pipeline_mode = #tpu.pipeline_mode<synchronous>, transform_indices = @transform_5, window_bounds = array<i64: 256, 128>}, {pipeline_mode = #tpu.pipeline_mode<synchronous>, transform_indices = @transform_6, window_bounds = array<i64: 1, 128>}, {transform_indices = @transform_7, window_bounds = array<i64: 128, 256>}, {transform_indices = @transform_8, window_bounds = array<i64: 16, 256>}]} {
    %c0_i32 = arith.constant 0 : i32
    %0 = arith.cmpi eq, %arg1, %c0_i32 : i32
    %1 = arith.extui %0 : i1 to i32
    %c0_i32_0 = arith.constant 0 : i32
    %2 = arith.cmpi ne, %1, %c0_i32_0 : i32
    scf.if %2 {
      %c0_6 = arith.constant 0 : index
      %c0_7 = arith.constant 0 : index
      %8 = vector.load %arg2[%c0_6, %c0_7] : memref<16x128xf32, #tpu.memory_space<vmem>>, vector<16x128xf32>
      %9 = arith.truncf %8 : vector<16x128xf32> to vector<16x128xbf16>
      %c0_8 = arith.constant 0 : index
      %c0_9 = arith.constant 0 : index
      %10 = vector.load %arg3[%c0_8, %c0_9] : memref<128x256xbf16, #tpu.memory_space<vmem>>, vector<128x256xbf16>
      %cst_10 = arith.constant dense<0.000000e+00> : vector<16x256xf32>
      %11 = tpu.matmul %9, %10, %cst_10 {dimension_numbers = #tpu.dot_dimension_numbers<[1], [0], [0], [1], [0, 0, 1, 1], [], []>} : vector<16x128xbf16>, vector<128x256xbf16>, vector<16x256xf32> -> vector<16x256xf32>
      %c0_11 = arith.constant 0 : index
      %c0_12 = arith.constant 0 : index
      %12 = vector.load %arg4[%c0_11, %c0_12] : memref<1x256xf32, #tpu.memory_space<vmem>>, vector<1x256xf32>
      %13 = vector.broadcast %12 : vector<1x256xf32> to vector<16x256xf32>
      %14 = arith.addf %11, %13 : vector<16x256xf32>
      %cst_13 = arith.constant 0.000000e+00 : f32
      %15 = vector.broadcast %cst_13 : f32 to vector<16x256xf32>
      %16 = arith.maximumf %14, %15 : vector<16x256xf32>
      %17 = arith.truncf %16 : vector<16x256xf32> to vector<16x256xbf16>
      %c0_14 = arith.constant 0 : index
      %c0_15 = arith.constant 0 : index
      %18 = vector.load %arg5[%c0_14, %c0_15] : memref<256x256xbf16, #tpu.memory_space<vmem>>, vector<256x256xbf16>
      %cst_16 = arith.constant dense<0.000000e+00> : vector<16x256xf32>
      %19 = tpu.matmul %17, %18, %cst_16 {dimension_numbers = #tpu.dot_dimension_numbers<[1], [0], [0], [1], [0, 0, 1, 1], [], []>} : vector<16x256xbf16>, vector<256x256xbf16>, vector<16x256xf32> -> vector<16x256xf32>
      %c0_17 = arith.constant 0 : index
      %c0_18 = arith.constant 0 : index
      %20 = vector.load %arg6[%c0_17, %c0_18] : memref<1x256xf32, #tpu.memory_space<vmem>>, vector<1x256xf32>
      %21 = vector.broadcast %20 : vector<1x256xf32> to vector<16x256xf32>
      %22 = arith.addf %19, %21 : vector<16x256xf32>
      %cst_19 = arith.constant 0.000000e+00 : f32
      %23 = vector.broadcast %cst_19 : f32 to vector<16x256xf32>
      %24 = arith.maximumf %22, %23 : vector<16x256xf32>
      %25 = arith.truncf %24 : vector<16x256xf32> to vector<16x256xbf16>
      %c0_20 = arith.constant 0 : index
      %c0_21 = arith.constant 0 : index
      %26 = vector.load %arg7[%c0_20, %c0_21] : memref<256x128xbf16, #tpu.memory_space<vmem>>, vector<256x128xbf16>
      %cst_22 = arith.constant dense<0.000000e+00> : vector<16x128xf32>
      %27 = tpu.matmul %25, %26, %cst_22 {dimension_numbers = #tpu.dot_dimension_numbers<[1], [0], [0], [1], [0, 0, 1, 1], [], []>} : vector<16x256xbf16>, vector<256x128xbf16>, vector<16x128xf32> -> vector<16x128xf32>
      %c0_23 = arith.constant 0 : index
      %c0_24 = arith.constant 0 : index
      %28 = vector.load %arg8[%c0_23, %c0_24] : memref<1x128xf32, #tpu.memory_space<vmem>>, vector<1x128xf32>
      %29 = vector.broadcast %28 : vector<1x128xf32> to vector<16x128xf32>
      %30 = arith.addf %27, %29 : vector<16x128xf32>
      %31 = arith.mulf %30, %30 : vector<16x128xf32>
      %cst_25 = arith.constant dense<0.000000e+00> : vector<16xf32>
      %32 = vector.multi_reduction <add>, %31, %cst_25 [1] : vector<16x128xf32> to vector<16xf32>
      %33 = vector.shape_cast %32 : vector<16xf32> to vector<16x1xf32>
      %cst_26 = arith.constant 1.000000e-24 : f32
      %34 = vector.broadcast %cst_26 : f32 to vector<16x1xf32>
      %35 = arith.maximumf %33, %34 : vector<16x1xf32>
      %36 = math.rsqrt %35 : vector<16x1xf32>
      %37 = vector.broadcast %36 : vector<16x1xf32> to vector<16x128xf32>
      %38 = arith.mulf %30, %37 : vector<16x128xf32>
      %c0_27 = arith.constant 0 : index
      %c0_28 = arith.constant 0 : index
      %39 = vector.load %arg11[%c0_27, %c0_28] : memref<16x128xf32, #tpu.memory_space<vmem>>, vector<16x128xf32>
      tpu.vector_store %arg11[%c0_27, %c0_28], %38 {strides = array<i32>} : memref<16x128xf32, #tpu.memory_space<vmem>>, vector<16x128xf32>,
    } else {
    }
    %c0 = arith.constant 0 : index
    %c0_1 = arith.constant 0 : index
    %3 = vector.load %arg11[%c0, %c0_1] : memref<16x128xf32, #tpu.memory_space<vmem>>, vector<16x128xf32>
    %4 = arith.truncf %3 : vector<16x128xf32> to vector<16x128xbf16>
    %c0_2 = arith.constant 0 : index
    %c0_3 = arith.constant 0 : index
    %5 = vector.load %arg9[%c0_2, %c0_3] : memref<128x256xbf16, #tpu.memory_space<vmem>>, vector<128x256xbf16>
    %cst = arith.constant dense<0.000000e+00> : vector<16x256xf32>
    %6 = tpu.matmul %4, %5, %cst {dimension_numbers = #tpu.dot_dimension_numbers<[1], [0], [0], [1], [0, 0, 1, 1], [], []>} : vector<16x128xbf16>, vector<128x256xbf16>, vector<16x256xf32> -> vector<16x256xf32>
    %c0_4 = arith.constant 0 : index
    %c0_5 = arith.constant 0 : index
    %7 = vector.load %arg10[%c0_4, %c0_5] : memref<16x256xf32, #tpu.memory_space<vmem>>, vector<16x256xf32>
    tpu.vector_store %arg10[%c0_4, %c0_5], %6 {strides = array<i32>} : memref<16x256xf32, #tpu.memory_space<vmem>>, vector<16x256xf32>,
    return
  }
  func.func @transform_0(%arg0: i32, %arg1: i32) -> (i32, i32) {
    %c0_i32 = arith.constant 0 : i32
    %c0_i32_0 = arith.constant 0 : i32
    return %arg0, %c0_i32 : i32, i32
  }
  func.func @transform_1(%arg0: i32, %arg1: i32) -> (i32, i32) {
    %c0_i32 = arith.constant 0 : i32
    %c0_i32_0 = arith.constant 0 : i32
    %c0_i32_1 = arith.constant 0 : i32
    return %c0_i32, %c0_i32_0 : i32, i32
  }
  func.func @transform_2(%arg0: i32, %arg1: i32) -> (i32, i32) {
    %c0_i32 = arith.constant 0 : i32
    %c0_i32_0 = arith.constant 0 : i32
    %c0_i32_1 = arith.constant 0 : i32
    return %c0_i32, %c0_i32_0 : i32, i32
  }
  func.func @transform_3(%arg0: i32, %arg1: i32) -> (i32, i32) {
    %c0_i32 = arith.constant 0 : i32
    %c0_i32_0 = arith.constant 0 : i32
    %c0_i32_1 = arith.constant 0 : i32
    return %c0_i32, %c0_i32_0 : i32, i32
  }
  func.func @transform_4(%arg0: i32, %arg1: i32) -> (i32, i32) {
    %c0_i32 = arith.constant 0 : i32
    %c0_i32_0 = arith.constant 0 : i32
    %c0_i32_1 = arith.constant 0 : i32
    return %c0_i32, %c0_i32_0 : i32, i32
  }
  func.func @transform_5(%arg0: i32, %arg1: i32) -> (i32, i32) {
    %c0_i32 = arith.constant 0 : i32
    %c0_i32_0 = arith.constant 0 : i32
    %c0_i32_1 = arith.constant 0 : i32
    return %c0_i32, %c0_i32_0 : i32, i32
  }
  func.func @transform_6(%arg0: i32, %arg1: i32) -> (i32, i32) {
    %c0_i32 = arith.constant 0 : i32
    %c0_i32_0 = arith.constant 0 : i32
    %c0_i32_1 = arith.constant 0 : i32
    return %c0_i32, %c0_i32_0 : i32, i32
  }
  func.func @transform_7(%arg0: i32, %arg1: i32) -> (i32, i32) {
    %c0_i32 = arith.constant 0 : i32
    %c0_i32_0 = arith.constant 0 : i32
    return %c0_i32, %arg1 : i32, i32
  }
  func.func @transform_8(%arg0: i32, %arg1: i32) -> (i32, i32) {
    %c0_i32 = arith.constant 0 : i32
    return %arg0, %arg1 : i32, i32
  }
}

</mosaic_0001>

<bundles_post_ra>
// kernel: tpu_custom_call.1
= control target key start
LH: loop header
LB: loop body
LE: loop exit
PB: predicated region body
PF: predicated region fallthrough
CT: control target
= control target key end

     0   :  { %s2706_s0 = inlined_call_operand.hbm [shape: f32[32,128], index: 0, kind: input, shape index: {}]   ;;  %s2707_s1 = inlined_call_operand.hbm [shape: bf16[128,256], index: 1, kind: input, shape index: {}]   ;;  %s2708_s2 = inlined_call_operand.hbm [shape: f32[1,256], index: 2, kind: input, shape index: {}]   ;;  %s2709_s3 = inlined_call_operand.hbm [shape: bf16[256,256], index: 3, kind: input, shape index: {}]   ;;  %s2710_s4 = inlined_call_operand.vmem [shape: f32[1,256], index: 4, kind: input, shape index: {}]   ;;  %s2711_s5 = inlined_call_operand.hbm [shape: bf16[256,128], index: 5, kind: input, shape index: {}]   ;;  %s2712_s6 = inlined_call_operand.vmem [shape: f32[1,128], index: 6, kind: input, shape index: {}]   ;;  %s2713_s7 = inlined_call_operand.hbm [shape: bf16[128,512], index: 7, kind: input, shape index: {}]   ;;  %s2714_s8 = inlined_call_operand.hbm [shape: f32[32,512], index: 8, kind: output, shape index: {}]  }
   0x1   :  { %2730 = sst [smem:[#allocation30_spill]] %s2706_s0 }
   0x2   :  { %2731 = sst [smem:[#allocation31_spill]] %s2707_s1 }
   0x3   :  { %2732 = sst [smem:[#allocation32_spill]] %s2708_s2 }
   0x4   :  { %2733 = sst [smem:[#allocation33_spill]] %s2709_s3 }
   0x5   :  { %2734 = sst [smem:[#allocation34_spill]] %s2710_s4 }
   0x6   :  { %2735 = sst [smem:[#allocation35_spill]] %s2711_s5 }
   0x7   :  { %2736 = sst [smem:[#allocation36_spill]] %s2712_s6 }
   0x8   :  { %2737 = sst [smem:[#allocation37_spill]] %s2714_s8 }
   0x9   :  { %13 = vsyncpa [#allocation4], 0 }
   0xa   :  { %15 = vsyncpa [#allocation4 + $0x1], 0 }
   0xb   :  { %16 = vsyncpa [#allocation7], 0 }
   0xc   :  { %17 = vsyncpa [#allocation10], 0 }
   0xd   :  { %18 = vsyncpa [#allocation13], 0 }
   0xe   :  { %20 = vsyncpa [#allocation13 + $0x1], 0 }
   0xf   :  { %21 = vsyncpa [#allocation5], 0 }
  0x10   :  { %23 = vsyncpa [#allocation5 + $0x1], 0  ;;  %s2358_s27 = smov 0   ;;  %s2360_s28 = smov 0  }
  0x11   :  { %s2362_s29 = smov 0   ;;  %s2364_s30 = smov 0  }
  0x12   :  { %s2366_s9 = smov 0   ;;  %s2368_s10 = smov 0  }
  0x13   :  { %s2370_s11 = smov 0   ;;  %s2372_s12 = smov 0  }
  0x14   :  { %s2374_s13 = smov 0   ;;  %s2376_s14 = smov 0  }
  0x15   :  { %s2378_s15 = smov 0   ;;  %s2380_s16 = smov 0  }
  0x16   :  { %s2382_s17 = smov 0   ;;  %s2384_s18 = smov 0  }
  0x17 LB: > { %2738 = sst [smem:[#allocation20_spill]] %s2247_s27  ;;  %s1343_s19 = sadd.s32 4294967295, %s2299_s18   ;;  %s2299_s18 = sphi %s2384_s18, %s29_s18   ;;  %s2295_s17 = sphi %s2382_s17, %s2791_s17   ;;  %s2291_s16 = sphi %s2380_s16, %s2781_s16   ;;  %s2287_s15 = sphi %s2378_s15, %s2790_s15   ;;  %s2283_s14 = sphi %s2376_s14, %s2789_s14   ;;  %s2279_s13 = sphi %s2374_s13, %s2788_s13   ;;  %s2275_s12 = sphi %s2372_s12, %s2787_s12   ;;  %s2271_s11 = sphi %s2370_s11, %s2786_s11   ;;  %s2267_s10 = sphi %s2368_s10, %s2785_s10   ;;  %s2263_s9 = sphi %s2366_s9, %s2784_s9   ;;  %s2259_s30 = sphi %s2364_s30, %s2779_s30   ;;  %s2255_s29 = sphi %s2362_s29, %s2783_s29   ;;  %s2251_s28 = sphi %s2360_s28, %s2782_s28   ;;  %s2247_s27 = sphi %s2358_s27, %s2778_s27  }
  0x18   : > { %2739 = sst [smem:[#allocation21_spill]] %s2251_s28  ;;  %s1344_s20 = sadd.s32 4294967294, %s2299_s18  }
  0x19   : > { %2740 = sst [smem:[#allocation22_spill]] %s2263_s9  ;;  %p2428_p0 = scmp.eq.s32.totalorder %s1343_s19, 0 }
  0x1a   : > { %2741 = sst [smem:[#allocation23_spill]] %s2283_s14  ;;  %p213_p1 = scmp.ne.s32.totalorder %s2263_s9, %s2259_s30 }
  0x1b   : > { %2742 = sst [smem:[#allocation24_spill]] %s2287_s15  ;;  %p238_p2 = scmp.ne.s32.totalorder %s2255_s29, %s2251_s28 }
  0x1c   : > { %2743 = sst [smem:[#allocation25_spill]] %s2291_s16  ;;  %p239_p3 = scmp.eq.s32.totalorder %s1343_s19, 3 }
  0x1d   : > { %p2437_p4 = por %p213_p1, %p2428_p0  ;;  %p244_p5 = scmp.ne.s32.totalorder %s2251_s28, %s2247_s27 }
  0x1e   : > { %p2443_p6 = por %p239_p3, %p238_p2  ;;  %p245_p7 = scmp.eq.s32.totalorder %s1344_s20, 3 }
  0x1f   : > { %s2745_s22 = scalar_select %p2437_p4, 1, 0 }
  0x20   : > { %s2747_s23 = scalar_select %p2443_p6, 1, 0 }
  0x21   : > { %2746 = sst [smem:[#allocation26_spill]] %s2745_s22  ;;  %p1345_p8 = scmp.ge.s32.totalorder %s2299_s18, 1 }
  0x22   : > { %2748 = sst [smem:[#allocation27_spill]] %s2747_s23  ;;  %p252_p9 = scmp.lt.s32.totalorder %s2299_s18, 5 }
  0x23   : > { %p2449_p10 = por %p245_p7, %p244_p5  ;;  %s2752_s1 = sld [smem:[#allocation31_spill]] }
  0x24   : > { %p2453_p11 = pnand %p1345_p8, %p252_p9  ;;  %s2301_s27 = smov [#allocation6]  }
  0x25   : > { %s2749_s24 = scalar_select %p2449_p10, 1, 0 }
  0x26   : > { %p1798_p12 = pneg %p2453_p11  ;;  %s265_s20 = sshll.u32 %s2301_s27, 4  ;;  %s266_s20 = int_to_ptr.vmem [resolvable:$true] %s265_s20 }
  0x27   : > { %2750 = sst [smem:[#allocation28_spill]] %s2749_s24  ;;  %s2720_s26 = smov 128  }
  0x28   : > { %p2464_p13 = pnand %p1798_p12, %p2428_p0  ;;  %s2754_s3 = sld [smem:[#allocation33_spill]] }
  0x29   : > { %s263_s19 = sshll.u32 %s2752_s1, 4  ;;  %s2722_s30 = smov 8   ;;  %s264_s19 = int_to_ptr.hbm [resolvable:$true] %s263_s19 }
  0x2a   : > { %1801 = dma.hbm_to_vmem [thread:$0]  (!%p2464_p13), %s264_s19, 2048, %s266_s20, [#allocation7], %s2720_s26, %s2720_s26, %s2722_s30  }
  0x2b   : > { %s2755_s2 = sld [smem:[#allocation32_spill]]  ;;  %s2304_s4 = smov [#allocation9]  }
  0x2c   : > { %s291_s14 = sshll.u32 %s2304_s4, 4  ;;  %s2305_s8 = smov [#allocation8]   ;;  %s292_s14 = int_to_ptr.vmem [resolvable:$true] %s291_s14 }
  0x2d   : > { %s280_s1 = sshll.u32 %s2305_s8, 4  ;;  %s2756_s5 = sld [smem:[#allocation35_spill]]  ;;  %s281_s1 = int_to_ptr.vmem [resolvable:$true] %s280_s1 }
  0x2e   : > { %s289_s15 = sshll.u32 %s2754_s3, 4  ;;  %s2306_s20 = smov [#allocation11]   ;;  %s290_s15 = int_to_ptr.hbm [resolvable:$true] %s289_s15 }
  0x2f   : > { %1807 = dma.hbm_to_vmem [thread:$0]  (!%p2464_p13), %s290_s15, 4096, %s292_s14, [#allocation10], %s2720_s26, %s2720_s26, %s2722_s30  }
  0x30   : > { %s308_s14 = sshll.u32 %s2306_s20, 4  ;;  %s2307_s15 = smov 64   ;;  %s309_s14 = int_to_ptr.vmem [resolvable:$true] %s308_s14 }
  0x31   : > { %s278_s6 = sshll.u32 %s2755_s2, 4  ;;  %s2308_s27 = smov 4   ;;  %s279_s6 = int_to_ptr.hbm [resolvable:$true] %s278_s6 }
  0x32   : > { %1804 = dma.hbm_to_vmem [thread:$0]  (!%p2464_p13), %s279_s6, 32, %s281_s1, [#allocation7]  }
  0x33   : > { %s306_s4 = sshll.u32 %s2756_s5, 4  ;;  %s41_s8 = sadd.s32 1, %s2295_s17  ;;  %s307_s4 = int_to_ptr.hbm [resolvable:$true] %s306_s4 }
  0x34   : > { %1810 = dma.hbm_to_vmem [thread:$0]  (!%p2464_p13), %s307_s4, 2048, %s309_s14, [#allocation10], %s2307_s15, %s2307_s15, %s2308_s27  }
  0x35   : > { %p55_p1 = scmp.ne.s32.totalorder %s2279_s13, %s2275_s12  ;;  %p56_p2 = scmp.eq.s32.totalorder %s2299_s18, 0 }
  0x36   : > { %p61_p3 = scmp.ne.s32.totalorder %s2275_s12, %s2271_s11  ;;  %p1826_p5 = scmp.lt.s32.totalorder %s2299_s18, 4 }
  0x37   : > { %s325_s24 = sand.u32 1, %s2279_s13   ;;  %p57_p7 = por %p56_p2, %p55_p1 }
  0x38   : > { %p2504_p8 = por %p2428_p0, %p61_p3  ;;  %s1351_s23 = sshll.u32 %s325_s24, 4 }
  0x39   : > { %s1693_s1 = sshll.u32 %s2295_s17, 4  ;;  %s2758_s0 = sld [smem:[#allocation30_spill]] }
  0x3a   : > { %s329_s20 = scalar_lea.vmem [#allocation3], %s1351_s23  ;;  %p1812_p9 = pnand %p1826_p5, %p57_p7 }
  0x3b   : > { %s337_s14 = sshll.u32 %s329_s20, 4  ;;  %s326_s27 = scalar_lea.sflag [#allocation4], %s325_s24  ;;  %s338_s14 = int_to_ptr.vmem [resolvable:$true] %s337_s14 }
  0x3c   : > { %s2759_s26 = smov 128   ;;  %s38_s19 = sadd.s32 1, %s2291_s16 }
  0x3d   : > { %p39_p12 = scmp.ge.s32.totalorder %s38_s19, 2  ;;  %p207_p13 = scmp.ne.s32.totalorder %s2267_s10, %s2263_s9 }
  0x3e   : > { %s228_s23 = sadd.s32 1, %s2255_s29  ;;  %s1694_s20 = sshll.u32 %s2291_s16, 3 }
  0x3f   : > { %s334_s11 = scalar_lea.hbm %s2758_s0, %s1693_s1  ;;  %s200_s1 = sadd.s32 1, %s2267_s10 }
  0x40   : > { %s335_s15 = sshll.u32 %s334_s11, 4  ;;  %s2793_s19 = smov (%p39_p12, %s38_s19), 0  ;;  %s336_s15 = int_to_ptr.hbm [resolvable:$true] %s335_s15 }
  0x41   : > { %1814 = dma.hbm_to_vmem [thread:$0]  (!%p1812_p9), %s336_s15, 256, %s338_s14, %s326_s27, %s2759_s26, %s2759_s26, %s2722_s30  }
  0x42   : > { %2760 = sst [smem:[#allocation29_spill]] %s2793_s19  ;;  %s2795_s8 = smov (!%p39_p12, %s41_s8), %s2295_s17 }
  0x43   : > { %s197_s4 = ssub.s32 %s2291_s16, %s2793_s19  ;;  %p2529_p1 = por %p207_p13, %p56_p2 }
  0x44   : > { %p43_p3 = scmp.ge.s32.totalorder %s2795_s8, 2  ;;  %p198_p7 = scmp.eq.s32.totalorder %s197_s4, 0 }
  0x45   : > { %s347_s11 = sand.u32 1, %s2267_s10   ;;  %s2762_s0 = sadd.s32 1, %s2279_s13 }
  0x46   : > { %s2797_s8 = smov (%p43_p3, %s2795_s8), 0  ;;  %s1354_s30 = sshll.u32 %s347_s11, 7 }
  0x47   : > { %s2538_s14 = scalar_select %p198_p7, %s2267_s10, %s200_s1  }
  0x48   : > { %s45_s15 = ssub.s32 %s2295_s17, %s2797_s8  ;;  %s356_s16 = scalar_lea.hbm %s2713_s7, %s1694_s20 }
  0x49   : > { %p46_p9 = scmp.eq.s32.totalorder %s45_s15, 0  ;;  %s225_s27 = sor.u32 %s197_s4, %s45_s15 }
  0x4a   : > { %p226_p12 = scmp.eq.s32.totalorder %s225_s27, 0  ;;  %s357_s28 = sshll.u32 %s356_s16, 4  ;;  %s358_s28 = int_to_ptr.hbm [resolvable:$true] %s357_s28 }
  0x4b   : > { %s2545_s2 = scalar_select %p46_p9, %s2279_s13, %s2762_s0  }
  0x4c   : > { %s2548_s3 = scalar_select %p226_p12, %s2255_s29, %s228_s23  }
  0x4d   : > { %s351_s22 = scalar_lea.vmem [#allocation12], %s1354_s30  ;;  %p1815_p2 = pnand %p1826_p5, %p2529_p1 }
  0x4e   : > { %s359_s9 = sshll.u32 %s351_s22, 4  ;;  %s348_s1 = scalar_lea.sflag [#allocation13], %s347_s11  ;;  %s360_s9 = int_to_ptr.vmem [resolvable:$true] %s359_s9 }
  0x4f   : > { %s2309_s4 = smov 256   ;;  %s2763_s15 = smov 8  }
  0x50   : > { %1817 = dma.hbm_to_vmem [thread:$0]  (!%p1815_p2), %s358_s28, 2048, %s360_s9, %s348_s1, %s2309_s4, %s2759_s26, %s2763_s15  }
  0x51   : > { %371 = sbr.rel (%p2453_p11) target bundleno = 896 (0x380), region = 52  ;;  %s373_s0 = sand.u32 (!%p2453_p11), 1, %s2275_s12  }
  0x52   : > { %s2562_s5 = sshll.u32 (!%p2453_p11), %s373_s0, 4  ;;  %s374_s16 = scalar_lea.sflag (!%p2453_p11), [#allocation4], %s373_s0 }
  0x53   : > { %s377_s22 = scalar_lea.vmem (!%p2453_p11), [#allocation3], %s2562_s5 }
  0x56   : > { %2226 = dma.done.wait (%p2504_p8), %s374_s16, 256  }
  0x57   : > { %2228 = vsyncadd (%p2504_p8), %s374_s16, 4294967040 }
  0x58   : > { %2230 = dma.done.wait (%p2428_p0), [#allocation7], 2080  }
  0x59   : > { %2232 = vsyncadd (%p2428_p0), [#allocation7], 4294965216 }
  0x5a   : > { %2234 = dma.done.wait (%p2428_p0), [#allocation10], 6144  }
  0x5b   : > { %2236 = vsyncadd (%p2428_p0), [#allocation10], 4294961152  ;;  %s2764_s28 = sld [smem:[#allocation22_spill]] }
  0x61   : > { %s403_s25 = sand.u32 1, %s2764_s28  }
  0x62   : > { %s1363_s26 = sshll.u32 %s403_s25, 7  ;;  %s404_s30 = scalar_lea.sflag [#allocation13], %s403_s25 }
  0x63   : > { %s2578_s19 = scalar_lea.vmem [#allocation12], %s1363_s26 }
  0x64   : > { %2238 = dma.done.wait (%p2437_p4), %s404_s30, 2048  }
  0x65   : > { %2240 = vsyncadd (%p2437_p4), %s404_s30, 4294965248  ;;  %s2766_s6 = sld [smem:[#allocation21_spill]] }
  0x66   : > { %s2767_s21 = sld [smem:[#allocation23_spill]] }
  0x6b   : > { %s443_s23 = sand.u32 1, %s2766_s6  }
  0x6c   : > { %s1364_s24 = sshll.u32 %s443_s23, 5  ;;  %p1365_p0 = scmp.ne.s32.totalorder %s2767_s21, 0 }
  0x6d   : > { %s2587_s11 = scalar_lea.vmem [#allocation14], %s1364_s24  ;;  %s2768_s1 = sld [smem:[#allocation34_spill]] (!%p1365_p0) }
  0x6e   : > { %453 = sbr.rel (%p1365_p0) target bundleno = 722 (0x2d2), region = 80  ;;  %s2769_s0 = sld [smem:[#allocation36_spill]] (!%p1365_p0) }
  0x73   : > { %v1424_v0 = vld [vmem:[#allocation6 + $0x70] sm:$0xf]  ;;  %v1710_v1 = vld [vmem:[#allocation6 + $0x74] sm:$0xf0]  ;;  %v1709_v2 = vld [vmem:[#allocation6 + $0x74] sm:$0xf] }
  0x74   : > { %v1425_v3 = vor.u32 %v1710_v1, %v1424_v0  ;;  %v1426_v4 = vld [vmem:[#allocation6 + $0x78] sm:$0xf0]  ;;  %v1416_v5 = vld [vmem:[#allocation6 + $0x60] sm:$0xf]  ;;  %v1708_v6 = vld [vmem:[#allocation6 + $0x64] sm:$0xf0] }
  0x75   : > { %v1429_v7 = vor.u32 %v1709_v2, %v1426_v4  ;;  %v1707_v8 = vld [vmem:[#allocation6 + $0x64] sm:$0xf]  ;;  %v1418_v9 = vld [vmem:[#allocation6 + $0x68] sm:$0xf0]  ;;  %v1417_v10 = vor.u32 %v1708_v6, %v1416_v5  ;;  %v1408_v12 = vld [vmem:[#allocation6 + $0x50] sm:$0xf] }
  0x76   : > { %559 = vmatpush.bf16.msra.mxu0 %v1425_v3  ;;  %v1421_v11 = vor.u32 %v1707_v8, %v1418_v9  ;;  %v1706_v13 = vld [vmem:[#allocation6 + $0x54] sm:$0xf0]  ;;  %v1705_v14 = vld [vmem:[#allocation6 + $0x54] sm:$0xf]  ;;  %v1410_v15 = vld [vmem:[#allocation6 + $0x58] sm:$0xf0] }
  0x77   : > { %573 = vmatpush.bf16.msra.mxu1 %v1429_v7  ;;  %v1409_v16 = vor.u32 %v1706_v13, %v1408_v12  ;;  %v1413_v17 = vor.u32 %v1705_v14, %v1410_v15  ;;  %v1400_v18 = vld [vmem:[#allocation6 + $0x40] sm:$0xf]  ;;  %v1704_v19 = vld [vmem:[#allocation6 + $0x44] sm:$0xf0]  ;;  %v1703_v20 = vld [vmem:[#allocation6 + $0x44] sm:$0xf] }
  0x78   : > { %v1402_v21 = vld [vmem:[#allocation6 + $0x48] sm:$0xf0]  ;;  %v1401_v22 = vor.u32 %v1704_v19, %v1400_v18  ;;  %v1392_v23 = vld [vmem:[#allocation6 + $0x30] sm:$0xf]  ;;  %v1726_v25 = vld [vmem:[#allocation9 + $0x74] sm:$0xf0] }
  0x79   : > { %v1488_v24 = vld [vmem:[#allocation9 + $0x70] sm:$0xf]  ;;  %v1405_v26 = vor.u32 %v1703_v20, %v1402_v21  ;;  %v1702_v27 = vld [vmem:[#allocation6 + $0x34] sm:$0xf0]  ;;  %v1394_v32 = vld [vmem:[#allocation6 + $0x38] sm:$0xf0] }
  0x7a   : > { %560 = vmatpush.bf16.msra.mxu0 %v1417_v10  ;;  %v1489_v28 = vor.u32 %v1726_v25, %v1488_v24  ;;  %v1552_v29 = vld [vmem:[#allocation9 + $0xf0] sm:$0xf]  ;;  %v1742_v30 = vld [vmem:[#allocation9 + $0xf4] sm:$0xf0]  ;;  %v1480_v34 = vld [vmem:[#allocation9 + $0x60] sm:$0xf]  ;;  %v1393_v37 = vor.u32 %v1702_v27, %v1392_v23 }
  0x7b   : > { %574 = vmatpush.bf16.msra.mxu1 %v1421_v11  ;;  %v1701_v31 = vld [vmem:[#allocation6 + $0x34] sm:$0xf]  ;;  %v1553_v33 = vor.u32 %v1742_v30, %v1552_v29  ;;  %v1724_v35 = vld [vmem:[#allocation9 + $0x64] sm:$0xf0]  ;;  %v1544_v36 = vld [vmem:[#allocation9 + $0xe0] sm:$0xf] }
  0x7c   : > { %791 = vmatpush.bf16.msra.mxu2 %v1489_v28  ;;  %v1384_v38 = vld [vmem:[#allocation6 + $0x20] sm:$0xf]  ;;  %v1700_v39 = vld [vmem:[#allocation6 + $0x24] sm:$0xf0]  ;;  %v1481_v40 = vor.u32 %v1724_v35, %v1480_v34  ;;  %v1397_v42 = vor.u32 %v1701_v31, %v1394_v32  ;;  %v1699_v43 = vld [vmem:[#allocation6 + $0x24] sm:$0xf] }
  0x7d   : > { %805 = vmatpush.bf16.msra.mxu3 %v1553_v33  ;;  %v1740_v41 = vld [vmem:[#allocation9 + $0xe4] sm:$0xf0]  ;;  %v1472_v46 = vld [vmem:[#allocation9 + $0x50] sm:$0xf]  ;;  %v1722_v47 = vld [vmem:[#allocation9 + $0x54] sm:$0xf0]  ;;  %v1385_v51 = vor.u32 %v1700_v39, %v1384_v38 }
  0x7e   : > { %561 = vmatpush.bf16.msra.mxu0 %v1409_v16  ;;  %v1386_v44 = vld [vmem:[#allocation6 + $0x28] sm:$0xf0]  ;;  %v1545_v45 = vor.u32 %v1740_v41, %v1544_v36  ;;  %v1536_v48 = vld [vmem:[#allocation9 + $0xd0] sm:$0xf]  ;;  %v1738_v49 = vld [vmem:[#allocation9 + $0xd4] sm:$0xf0]  ;;  %v1473_v50 = vor.u32 %v1722_v47, %v1472_v46 }
  0x7f   : > { %575 = vmatpush.bf16.msra.mxu1 %v1413_v17  ;;  %v1376_v52 = vld [vmem:[#allocation6 + $0x10] sm:$0xf]  ;;  %v1537_v53 = vor.u32 %v1738_v49, %v1536_v48  ;;  %v1464_v54 = vld [vmem:[#allocation9 + $0x40] sm:$0xf]  ;;  %v1720_v55 = vld [vmem:[#allocation9 + $0x44] sm:$0xf0]  ;;  %v1389_v56 = vor.u32 %v1699_v43, %v1386_v44 }
  0x80   : > { %792 = vmatpush.bf16.msra.mxu2 %v1481_v40  ;;  %v1698_v57 = vld [vmem:[#allocation6 + $0x14] sm:$0xf0]  ;;  %v1528_v58 = vld [vmem:[#allocation9 + $0xc0] sm:$0xf]  ;;  %v1736_v59 = vld [vmem:[#allocation9 + $0xc4] sm:$0xf0]  ;;  %v1465_v62 = vor.u32 %v1720_v55, %v1464_v54 }
  0x81   : > { %806 = vmatpush.bf16.msra.mxu3 %v1545_v45  ;;  %v1697_v60 = vld [vmem:[#allocation6 + $0x14] sm:$0xf]  ;;  %v1378_v61 = vld [vmem:[#allocation6 + $0x18] sm:$0xf0]  ;;  %v1377_v63 = vor.u32 %v1698_v57, %v1376_v52  ;;  %v1529_v0 = vor.u32 %v1736_v59, %v1528_v58  ;;  %v1368_v2 = vld [vmem:[#allocation6] sm:$0xf] }
  0x82   : > { %562 = vmatpush.bf16.msra.mxu0 %v1401_v22  ;;  %v1381_v1 = vor.u32 %v1697_v60, %v1378_v61  ;;  %v1696_v3 = vld [vmem:[#allocation6 + $0x4] sm:$0xf0]  ;;  %v1695_v4 = vld [vmem:[#allocation6 + $0x4] sm:$0xf]  ;;  %v1370_v5 = vld [vmem:[#allocation6 + $0x8] sm:$0xf0] }
  0x83   : > { %576 = vmatpush.bf16.msra.mxu1 %v1405_v26  ;;  %v1725_v6 = vld [vmem:[#allocation9 + $0x74] sm:$0xf]  ;;  %v1490_v7 = vld [vmem:[#allocation9 + $0x78] sm:$0xf0]  ;;  %v1369_v10 = vor.u32 %v1696_v3, %v1368_v2  ;;  %v1373_v13 = vor.u32 %v1695_v4, %v1370_v5  ;;  %v1723_v16 = vld [vmem:[#allocation9 + $0x64] sm:$0xf] }
  0x84   : > { %793 = vmatpush.bf16.msra.mxu2 %v1473_v50  ;;  %v1741_v8 = vld [vmem:[#allocation9 + $0xf4] sm:$0xf]  ;;  %v1554_v9 = vld [vmem:[#allocation9 + $0xf8] sm:$0xf0]  ;;  %v1493_v14 = vor.u32 %v1725_v6, %v1490_v7  ;;  %v1482_v17 = vld [vmem:[#allocation9 + $0x68] sm:$0xf0] }
  0x85   : > { %807 = vmatpush.bf16.msra.mxu3 %v1537_v53  ;;  %v454_v11 = vld [vmem:[%s377_s22] sm:$0xff]  ;;  %v455_v12 = vld [vmem:[%s377_s22 + $0x8] sm:$0xff]  ;;  %v1557_v15 = vor.u32 %v1741_v8, %v1554_v9  ;;  %v1485_v21 = vor.u32 %v1723_v16, %v1482_v17 }
  0x86   : > { %563 = vmatpush.bf16.msra.mxu0 %v1393_v37  ;;  %v456_v18 = vpack.c.bf16 %v455_v12, %v454_v11  ;;  %v1739_v19 = vld [vmem:[#allocation9 + $0xe4] sm:$0xf]  ;;  %v1546_v20 = vld [vmem:[#allocation9 + $0xe8] sm:$0xf0]  ;;  %v1721_v23 = vld [vmem:[#allocation9 + $0x54] sm:$0xf] }
  0x87   : > { %577 = vmatpush.bf16.msra.mxu1 %v1397_v42  ;;  %v1549_v22 = vor.u32 %v1739_v19, %v1546_v20  ;;  %v1474_v24 = vld [vmem:[#allocation9 + $0x58] sm:$0xf0]  ;;  %v1737_v25 = vld [vmem:[#allocation9 + $0xd4] sm:$0xf]  ;;  %v1719_v29 = vld [vmem:[#allocation9 + $0x44] sm:$0xf] }
  0x88   : > { %794 = vmatpush.bf16.msra.mxu2 %v1465_v62  ;;  %v1538_v26 = vld [vmem:[#allocation9 + $0xd8] sm:$0xf0]  ;;  %v1477_v27 = vor.u32 %v1721_v23, %v1474_v24  ;;  %v1466_v30 = vld [vmem:[#allocation9 + $0x48] sm:$0xf0]  ;;  %v1735_v31 = vld [vmem:[#allocation9 + $0xc4] sm:$0xf] }
  0x89   : > { %808 = vmatpush.bf16.msra.mxu3 %v1529_v0  ;;  %v1541_v28 = vor.u32 %v1737_v25, %v1538_v26  ;;  %v1530_v32 = vld [vmem:[#allocation9 + $0xc8] sm:$0xf0]  ;;  %v1469_v33 = vor.u32 %v1719_v29, %v1466_v30  ;;  %v1456_v35 = vld [vmem:[#allocation9 + $0x30] sm:$0xf]  ;;  %v1718_v36 = vld [vmem:[#allocation9 + $0x34] sm:$0xf0] }
  0x8a   : > { %564 = vmatpush.bf16.msra.mxu0 %v1385_v51  ;;  %v1533_v34 = vor.u32 %v1735_v31, %v1530_v32  ;;  %v1520_v37 = vld [vmem:[#allocation9 + $0xb0] sm:$0xf]  ;;  %v1457_v38 = vor.u32 %v1718_v36, %v1456_v35  ;;  %v1734_v39 = vld [vmem:[#allocation9 + $0xb4] sm:$0xf0]  ;;  %v1717_v40 = vld [vmem:[#allocation9 + $0x34] sm:$0xf] }
  0x8b   : > { %578 = vmatpush.bf16.msra.mxu1 %v1389_v56  ;;  %v1458_v41 = vld [vmem:[#allocation9 + $0x38] sm:$0xf0]  ;;  %v1521_v42 = vor.u32 %v1734_v39, %v1520_v37  ;;  %v1733_v44 = vld [vmem:[#allocation9 + $0xb4] sm:$0xf]  ;;  %v1448_v47 = vld [vmem:[#allocation9 + $0x20] sm:$0xf] }
  0x8c   : > { %v1461_v43 = vor.u32 %v1717_v40, %v1458_v41  ;;  %v1522_v45 = vld [vmem:[#allocation9 + $0xb8] sm:$0xf0]  ;;  %795 = vmatpush.bf16.msra.mxu2 %v1457_v38  ;;  %v1716_v48 = vld [vmem:[#allocation9 + $0x24] sm:$0xf0]  ;;  %v1512_v50 = vld [vmem:[#allocation9 + $0xa0] sm:$0xf] }
  0x8d   : > { %v1525_v46 = vor.u32 %v1733_v44, %v1522_v45  ;;  %809 = vmatpush.bf16.msra.mxu3 %v1521_v42  ;;  %v1449_v49 = vor.u32 %v1716_v48, %v1448_v47  ;;  %v1732_v51 = vld [vmem:[#allocation9 + $0xa4] sm:$0xf0]  ;;  %v1715_v52 = vld [vmem:[#allocation9 + $0x24] sm:$0xf]  ;;  %v1450_v54 = vld [vmem:[#allocation9 + $0x28] sm:$0xf0] }
  0x8e   : > { %565 = vmatpush.bf16.msra.mxu0 %v1377_v63  ;;  %v1513_v53 = vor.u32 %v1732_v51, %v1512_v50  ;;  %v1731_v55 = vld [vmem:[#allocation9 + $0xa4] sm:$0xf]  ;;  %v1514_v56 = vld [vmem:[#allocation9 + $0xa8] sm:$0xf0]  ;;  %v1453_v57 = vor.u32 %v1715_v52, %v1450_v54  ;;  %v1440_v59 = vld [vmem:[#allocation9 + $0x10] sm:$0xf] }
  0x8f   : > { %579 = vmatpush.bf16.msra.mxu1 %v1381_v1  ;;  %v1517_v58 = vor.u32 %v1731_v55, %v1514_v56  ;;  %v1714_v60 = vld [vmem:[#allocation9 + $0x14] sm:$0xf0]  ;;  %v1504_v61 = vld [vmem:[#allocation9 + $0x90] sm:$0xf]  ;;  %v1713_v0 = vld [vmem:[#allocation9 + $0x14] sm:$0xf] }
  0x90   : > { %796 = vmatpush.bf16.msra.mxu2 %v1449_v49  ;;  %v1441_v62 = vor.u32 %v1714_v60, %v1440_v59  ;;  %v1730_v63 = vld [vmem:[#allocation9 + $0x94] sm:$0xf0]  ;;  %v1442_v1 = vld [vmem:[#allocation9 + $0x18] sm:$0xf0]  ;;  %v1729_v4 = vld [vmem:[#allocation9 + $0x94] sm:$0xf] }
  0x91   : > { %810 = vmatpush.bf16.msra.mxu3 %v1513_v53  ;;  %v1505_v2 = vor.u32 %v1730_v63, %v1504_v61  ;;  %v1445_v3 = vor.u32 %v1713_v0, %v1442_v1  ;;  %v1506_v5 = vld [vmem:[#allocation9 + $0x98] sm:$0xf0]  ;;  %v1432_v7 = vld [vmem:[#allocation9] sm:$0xf]  ;;  %v1712_v8 = vld [vmem:[#allocation9 + $0x4] sm:$0xf0] }
  0x92   : > { %566 = vmatpush.bf16.msra.mxu0 %v1369_v10  ;;  %v1509_v6 = vor.u32 %v1729_v4, %v1506_v5  ;;  %v1496_v9 = vld [vmem:[#allocation9 + $0x80] sm:$0xf]  ;;  %v1433_v10 = vor.u32 %v1712_v8, %v1432_v7  ;;  %v1728_v11 = vld [vmem:[#allocation9 + $0x84] sm:$0xf0]  ;;  %v1711_v12 = vld [vmem:[#allocation9 + $0x4] sm:$0xf] }
  0x93   : > { %580 = vmatpush.bf16.msra.mxu1 %v1373_v13  ;;  %v1434_v13 = vld [vmem:[#allocation9 + $0x8] sm:$0xf0]  ;;  %v1727_v16 = vld [vmem:[#allocation9 + $0x84] sm:$0xf]  ;;  %v1758_v19 = vld [vmem:[#allocation11 + $0x78] sm:$0xff] }
  0x94   : > { %797 = vmatpush.bf16.msra.mxu2 %v1441_v62  ;;  %v1498_v17 = vld [vmem:[#allocation9 + $0x88] sm:$0xf0]  ;;  %v1750_v20 = vld [vmem:[#allocation11 + $0x38] sm:$0xff]  ;;  %v1755_v24 = vld [vmem:[#allocation11 + $0x60] sm:$0xff] }
  0x95   : > { %567 = vmatmul.bf16.vlgmr.msra.gmra.mxu0 %v456_v18  ;;  %811 = vmatpush.bf16.msra.mxu3 %v1505_v2  ;;  %v1756_v23 = vld [vmem:[#allocation11 + $0x68] sm:$0xff]  ;;  %v473_v25 = vld [vmem:[#allocation8] sm:$0x3]  ;;  %v1747_v44 = vld [vmem:[#allocation11 + $0x20] sm:$0xff] }
  0x96   : > { %819 = vmatpush.bf16.msrb.mxu0 %v1493_v14  ;;  %581 = vmatmul.bf16.vlgmr.msra.gmra.mxu1 %v456_v18  ;;  %v1497_v14 = vor.u32 %v1728_v11, %v1496_v9  ;;  %v1501_v18 = vor.u32 %v1727_v16, %v1498_v17  ;;  %v476_v29 = vperm.slane %v473_v25, 1  ;;  %v1748_v42 = vld [vmem:[#allocation11 + $0x28] sm:$0xff]  ;;  %v1753_v45 = vld [vmem:[#allocation11 + $0x50] sm:$0xff]  ;;  %v1751_v49 = vld [vmem:[#allocation11 + $0x40] sm:$0xff] }
  0x97   : > { %833 = vmatpush.bf16.msrb.mxu1 %v1557_v15  ;;  %v1437_v15 = vor.u32 %v1711_v12, %v1434_v13  ;;  %v1752_v47 = vld [vmem:[#allocation11 + $0x48] sm:$0xff]  ;;  %v1745_v48 = vld [vmem:[#allocation11 + $0x10] sm:$0xff]  ;;  %v1743_v51 = vld [vmem:[#allocation11] sm:$0xff] }
  0x98   : > { %798 = vmatpush.bf16.msra.mxu2 %v1433_v10  ;;  %v1744_v50 = vld [vmem:[#allocation11 + $0x8] sm:$0xff] }
  0x99   : > { %812 = vmatpush.bf16.msra.mxu3 %v1497_v14  ;;  %v625_v52 = vld [vmem:[%s2768_s1] sm:$0x3] }
  0x9a   : > { %820 = vmatpush.bf16.msrb.mxu0 %v1485_v21  ;;  %v1757_v21 = vld [vmem:[#allocation11 + $0x70] sm:$0xff]  ;;  %v628_v54 = vperm.slane %v625_v52, 1  ;;  %v1956_v13 = vld [vmem:[%s2769_s0] ss:$0 sm:$0xff] }
  0x9b   : > { %834 = vmatpush.bf16.msrb.mxu1 %v1549_v22  ;;  %v1749_v22 = vld [vmem:[#allocation11 + $0x30] sm:$0xff] }
  0x9c   : > { %985 = vmatpush.bf16.msrb.mxu2 %v1750_v20 }
  0x9d   : > { %999 = vmatpush.bf16.msrb.mxu3 %v1758_v19 }
  0x9e   : > { %821 = vmatpush.bf16.msrb.mxu0 %v1477_v27 }
  0x9f   : > { %835 = vmatpush.bf16.msrb.mxu1 %v1541_v28  ;;  %v475_v28 = vperm.slane %v473_v25, 0 }
  0xa0   : > { %986 = vmatpush.bf16.msrb.mxu2 %v1749_v22 }
  0xa1   : > { %1000 = vmatpush.bf16.msrb.mxu3 %v1757_v21 }
  0xa2   : > { %822 = vmatpush.bf16.msrb.mxu0 %v1469_v33 }
  0xa3   : > { %836 = vmatpush.bf16.msrb.mxu1 %v1533_v34 }
  0xa4   : > { %987 = vmatpush.bf16.msrb.mxu2 %v1748_v42 }
  0xa5   : > { %1001 = vmatpush.bf16.msrb.mxu3 %v1756_v23 }
  0xa6   : > { %823 = vmatpush.bf16.msrb.mxu0 %v1461_v43  ;;  %v1754_v43 = vld [vmem:[#allocation11 + $0x58] sm:$0xff] }
  0xa7   : > { %837 = vmatpush.bf16.msrb.mxu1 %v1525_v46  ;;  %v1746_v46 = vld [vmem:[#allocation11 + $0x18] sm:$0xff] }
  0xa8   : > { %988 = vmatpush.bf16.msrb.mxu2 %v1747_v44 }
  0xa9   : > { %1002 = vmatpush.bf16.msrb.mxu3 %v1755_v24 }
  0xaa   : > { %824 = vmatpush.bf16.msrb.mxu0 %v1453_v57 }
  0xab   : > { %838 = vmatpush.bf16.msrb.mxu1 %v1517_v58  ;;  %v627_v58 = vperm.slane %v625_v52, 0 }
  0xac   : > { %989 = vmatpush.bf16.msrb.mxu2 %v1746_v46 }
  0xad   : > { %1003 = vmatpush.bf16.msrb.mxu3 %v1754_v43 }
  0xae   : > { %825 = vmatpush.bf16.msrb.mxu0 %v1445_v3 }
  0xaf   : > { %839 = vmatpush.bf16.msrb.mxu1 %v1509_v6 }
  0xb0   : > { %990 = vmatpush.bf16.msrb.mxu2 %v1745_v48 }
  0xb1   : > { %1004 = vmatpush.bf16.msrb.mxu3 %v1753_v45 }
  0xb2   : > { %826 = vmatpush.bf16.msrb.mxu0 %v1437_v15 }
  0xb3   : > { %840 = vmatpush.bf16.msrb.mxu1 %v1501_v18 }
  0xb4   : > { %991 = vmatpush.bf16.msrb.mxu2 %v1744_v50 }
  0xb5   : > { %1005 = vmatpush.bf16.msrb.mxu3 %v1752_v47 }
  0xb8   : > { %992 = vmatpush.bf16.msrb.mxu2 %v1743_v51 }
  0xb9   : > { %1006 = vmatpush.bf16.msrb.mxu3 %v1751_v49 }
 0x112   : > { %v568_v26 = vpop.f32.mrf.mxu0 }
 0x113   : > { %v582_v27 = vpop.f32.mrf.mxu1  ;;  %v569_v30 = vadd.f32 %v568_v26, %v475_v28 }
 0x114   : > { %v583_v31 = vadd.f32 %v582_v27, %v476_v29 }
 0x115   : > { %v587_v36 = vmax.f32 %v569_v30, 0.0 }
 0x116   : > { %v588_v38 = vmax.f32 %v583_v31, 0.0 }
 0x11a   : > { %v570_v32 = vpop.f32.mrf.mxu0 }
 0x11b   : > { %v571_v33 = vadd.f32 %v570_v32, %v475_v28  ;;  %v584_v34 = vpop.f32.mrf.mxu1 }
 0x11c   : > { %v585_v35 = vadd.f32 %v584_v34, %v476_v29 }
 0x11d   : > { %v589_v37 = vmax.f32 %v571_v33, 0.0 }
 0x11e   : > { %v590_v39 = vmax.f32 %v585_v35, 0.0 }
 0x11f   : > { %v591_v40 = vpack.c.bf16 %v589_v37, %v587_v36 }
 0x120   : > { %v592_v41 = vpack.c.bf16 %v590_v39, %v588_v38 }
 0x121   : > { %799 = vmatmul.bf16.vlgmr.msra.gmra.mxu2 %v591_v40  ;;  %827 = vmatmul.bf16.vlgmr.msrb.gmra.mxu0 %v591_v40 }
 0x122   : > { %813 = vmatmul.bf16.vlgmr.msra.gmra.mxu3 %v592_v41  ;;  %841 = vmatmul.bf16.vlgmr.msrb.gmra.mxu1 %v592_v41 }
 0x19e   : > { %v828_v53 = vpop.f32.mrf.mxu0 }
 0x19f   : > { %v842_v55 = vpop.f32.mrf.mxu1  ;;  %v829_v56 = vadd.f32 %v828_v53, %v628_v54 }
 0x1a1   : > { %v843_v61 = vadd.f32 %v842_v55, %v829_v56 }
 0x1a3   : > { %v848_v2 = vmax.f32 %v843_v61, 0.0 }
 0x1a4   : > { %v800_v57 = vpop.f32.mrf.mxu2 }
 0x1a5   : > { %v814_v59 = vpop.f32.mrf.mxu3  ;;  %v801_v0 = vadd.f32 %v800_v57, %v627_v58 }
 0x1a6   : > { %v830_v60 = vpop.f32.mrf.mxu0 }
 0x1a7   : > { %v831_v62 = vadd.f32 %v830_v60, %v628_v54  ;;  %v844_v63 = vpop.f32.mrf.mxu1  ;;  %v815_v5 = vadd.f32 %v814_v59, %v801_v0 }
 0x1a9   : > { %v845_v1 = vadd.f32 %v844_v63, %v831_v62  ;;  %v847_v10 = vmax.f32 %v815_v5, 0.0 }
 0x1ab   : > { %v850_v3 = vmax.f32 %v845_v1, 0.0 }
 0x1ac   : > { %v802_v4 = vpop.f32.mrf.mxu2 }
 0x1ad   : > { %v852_v6 = vpack.c.bf16 %v850_v3, %v848_v2  ;;  %v803_v7 = vadd.f32 %v802_v4, %v627_v58  ;;  %v816_v8 = vpop.f32.mrf.mxu3 }
 0x1af   : > { %v817_v9 = vadd.f32 %v816_v8, %v803_v7  ;;  %1007 = vmatmul.bf16.vlgmr.msrb.gmra.mxu3 %v852_v6 }
 0x1b1   : > { %v849_v11 = vmax.f32 %v817_v9, 0.0 }
 0x1b3   : > { %v851_v12 = vpack.c.bf16 %v849_v11, %v847_v10 }
 0x1b5   : > { %993 = vmatmul.bf16.vlgmr.msrb.gmra.mxu2 %v851_v12 }
 0x232   : > { %v1008_v14 = vpop.f32.mrf.mxu3 }
 0x238   : > { %v994_v15 = vpop.f32.mrf.mxu2 }
 0x239   : > { %v995_v16 = vadd.f32 %v1956_v13, %v994_v15 }
 0x23a   : > { %v1010_v21 = vpop.f32.mrf.mxu3 }
 0x23b   : > { %v1009_v17 = vadd.f32 %v1008_v14, %v995_v16 }
 0x23d   : > { %v1013_v18 = vmul.f32 %v1009_v17, %v1009_v17 }
 0x23f   : > { %1015 = vadd.xlane.f32.xlu0 %v1013_v18 }
 0x240   : > { %v996_v19 = vpop.f32.mrf.mxu2 }
 0x241   : > { %v997_v20 = vadd.f32 %v1956_v13, %v996_v19 }
 0x243   : > { %v1011_v22 = vadd.f32 %v1010_v21, %v997_v20 }
 0x245   : > { %v1014_v23 = vmul.f32 %v1011_v22, %v1011_v22 }
 0x247   : > { %1017 = vadd.xlane.f32.xlu0 %v1014_v23 }
 0x2b2   : > { %v1016_v24 = vpop.xlane.xlu0 %1015 }
 0x2b3   : > { %v1019_v25 = vmax.f32 %v1016_v24, 1e-24 }
 0x2b5   : > { %1957 = vrsqrt.f32 %v1019_v25  ;;  %vm1027_vm1 = vweird.f32 %v1019_v25 }
 0x2ba   : > { %v1018_v26 = vpop.xlane.xlu0 %1017 }
 0x2bb   : > { %v1958_v27 = vpop.eup %1957  ;;  %v1020_v28 = vmax.f32 %v1018_v26, 1e-24 }
 0x2bc   : > { %v1022_v29 = vmul.f32 %v1958_v27, %v1019_v25  ;;  %vm1028_vm0 = vweird.f32 %v1958_v27 }
 0x2bd   : > { %1959 = vrsqrt.f32 %v1020_v28  ;;  %vm1029_vm2 = vmor %vm1027_vm1, %vm1028_vm0  ;;  %vm1037_vm4 = vweird.f32 %v1020_v28 }
 0x2be   : > { %v1023_v30 = vmul.f32 %v1958_v27, %v1022_v29 }
 0x2c0   : > { %v1024_v31 = vmul.f32 0.5, %v1023_v30 }
 0x2c2   : > { %v1025_v32 = vsub.f32 1.5, %v1024_v31 }
 0x2c3   : > { %v1960_v33 = vpop.eup %1959 }
 0x2c4   : > { %v1026_v34 = vmul.f32 %v1958_v27, %v1025_v32  ;;  %v1032_v35 = vmul.f32 %v1960_v33, %v1020_v28  ;;  %vm1038_vm3 = vweird.f32 %v1960_v33 }
 0x2c5   : > { %vm1039_vm5 = vmor %vm1037_vm4, %vm1038_vm3 }
 0x2c6   : > { %v1030_v36 = vsel %vm1029_vm2, %v1958_v27, %v1026_v34  ;;  %v1033_v37 = vmul.f32 %v1960_v33, %v1032_v35 }
 0x2c7   : > { %v1041_v38 = vmul.f32 %v1030_v36, %v1009_v17 }
 0x2c8   : > { %v1034_v39 = vmul.f32 0.5, %v1033_v37 }
 0x2c9   : > { %1043 = vst [vmem:[#allocation2] sm:$0xff] %v1041_v38 }
 0x2ca   : > { %v1035_v40 = vsub.f32 1.5, %v1034_v39 }
 0x2cc   : > { %v1036_v41 = vmul.f32 %v1960_v33, %v1035_v40 }
 0x2ce   : > { %v1040_v42 = vsel %vm1039_vm5, %v1960_v33, %v1036_v41 }
 0x2cf   : > { %v1042_v43 = vmul.f32 %v1040_v42, %v1011_v22 }
 0x2d1   : > { %1044 = vst [vmem:[#allocation2 + $0x8] sm:$0xff] %v1042_v43 }
 0x2d2 PF: > { %v1680_v44 = vld [vmem:[%s2578_s19 + $0x70] sm:$0xf]  ;;  %v1774_v45 = vld [vmem:[%s2578_s19 + $0x74] sm:$0xf0]  ;;  %v1773_v46 = vld [vmem:[%s2578_s19 + $0x74] sm:$0xf] }
 0x2d3   : > { %v1681_v47 = vor.u32 %v1774_v45, %v1680_v44  ;;  %v1682_v48 = vld [vmem:[%s2578_s19 + $0x78] sm:$0xf0]  ;;  %v1672_v49 = vld [vmem:[%s2578_s19 + $0x60] sm:$0xf]  ;;  %v1772_v50 = vld [vmem:[%s2578_s19 + $0x64] sm:$0xf0] }
 0x2d4   : > { %v1685_v51 = vor.u32 %v1773_v46, %v1682_v48  ;;  %v1771_v52 = vld [vmem:[%s2578_s19 + $0x64] sm:$0xf]  ;;  %v1674_v53 = vld [vmem:[%s2578_s19 + $0x68] sm:$0xf0]  ;;  %v1673_v54 = vor.u32 %v1772_v50, %v1672_v49  ;;  %v1664_v56 = vld [vmem:[%s2578_s19 + $0x50] sm:$0xf] }
 0x2d5   : > { %1144 = vmatpush.bf16.msra.mxu0 %v1681_v47  ;;  %v1677_v55 = vor.u32 %v1771_v52, %v1674_v53  ;;  %v1770_v57 = vld [vmem:[%s2578_s19 + $0x54] sm:$0xf0]  ;;  %v1769_v58 = vld [vmem:[%s2578_s19 + $0x54] sm:$0xf]  ;;  %v1666_v59 = vld [vmem:[%s2578_s19 + $0x58] sm:$0xf0] }
 0x2d6   : > { %1158 = vmatpush.bf16.msra.mxu1 %v1685_v51  ;;  %v1665_v60 = vor.u32 %v1770_v57, %v1664_v56  ;;  %v1669_v61 = vor.u32 %v1769_v58, %v1666_v59  ;;  %v1656_v62 = vld [vmem:[%s2578_s19 + $0x40] sm:$0xf]  ;;  %v1768_v63 = vld [vmem:[%s2578_s19 + $0x44] sm:$0xf0]  ;;  %v1767_v0 = vld [vmem:[%s2578_s19 + $0x44] sm:$0xf] }
 0x2d7   : > { %v1658_v1 = vld [vmem:[%s2578_s19 + $0x48] sm:$0xf0]  ;;  %v1657_v2 = vor.u32 %v1768_v63, %v1656_v62  ;;  %v1648_v4 = vld [vmem:[%s2578_s19 + $0x30] sm:$0xf]  ;;  %v1766_v5 = vld [vmem:[%s2578_s19 + $0x34] sm:$0xf0] }
 0x2d8   : > { %v1661_v3 = vor.u32 %v1767_v0, %v1658_v1  ;;  %v1765_v6 = vld [vmem:[%s2578_s19 + $0x34] sm:$0xf]  ;;  %v1650_v7 = vld [vmem:[%s2578_s19 + $0x38] sm:$0xf0]  ;;  %v1649_v8 = vor.u32 %v1766_v5, %v1648_v4  ;;  %v1640_v10 = vld [vmem:[%s2578_s19 + $0x20] sm:$0xf] }
 0x2d9   : > { %1145 = vmatpush.bf16.msra.mxu0 %v1673_v54  ;;  %v1653_v9 = vor.u32 %v1765_v6, %v1650_v7  ;;  %v1764_v11 = vld [vmem:[%s2578_s19 + $0x24] sm:$0xf0]  ;;  %v1763_v12 = vld [vmem:[%s2578_s19 + $0x24] sm:$0xf]  ;;  %v1642_v13 = vld [vmem:[%s2578_s19 + $0x28] sm:$0xf0] }
 0x2da   : > { %1159 = vmatpush.bf16.msra.mxu1 %v1677_v55  ;;  %v1641_v14 = vor.u32 %v1764_v11, %v1640_v10  ;;  %v1645_v15 = vor.u32 %v1763_v12, %v1642_v13  ;;  %v1632_v16 = vld [vmem:[%s2578_s19 + $0x10] sm:$0xf]  ;;  %v1762_v17 = vld [vmem:[%s2578_s19 + $0x14] sm:$0xf0]  ;;  %v1761_v18 = vld [vmem:[%s2578_s19 + $0x14] sm:$0xf] }
 0x2db   : > { %v1634_v19 = vld [vmem:[%s2578_s19 + $0x18] sm:$0xf0]  ;;  %v1633_v20 = vor.u32 %v1762_v17, %v1632_v16  ;;  %s2770_s5 = sld [smem:[#allocation23_spill]]  ;;  %v1624_v22 = vld [vmem:[%s2578_s19] sm:$0xf]  ;;  %v1045_v27 = vld [vmem:[#allocation2] sm:$0xff] }
 0x2dc   : > { %v1637_v21 = vor.u32 %v1761_v18, %v1634_v19  ;;  %s2771_s16 = sld [smem:[#allocation24_spill]]  ;;  %v1760_v23 = vld [vmem:[%s2578_s19 + $0x4] sm:$0xf0]  ;;  %v1759_v24 = vld [vmem:[%s2578_s19 + $0x4] sm:$0xf]  ;;  %v1046_v28 = vld [vmem:[#allocation2 + $0x8] sm:$0xff] }
 0x2dd   : > { %1146 = vmatpush.bf16.msra.mxu0 %v1665_v60  ;;  %v1626_v25 = vld [vmem:[%s2578_s19 + $0x8] sm:$0xf0]  ;;  %v1625_v26 = vor.u32 %v1760_v23, %v1624_v22  ;;  %v1047_v30 = vpack.c.bf16 %v1046_v28, %v1045_v27  ;;  %s2773_s6 = sld [smem:[#allocation37_spill]]  ;;  %s1192_s20 = sshll.u32 %s2587_s11, 4  ;;  %s1193_s20 = int_to_ptr.vmem [resolvable:$true] %s1192_s20 }
 0x2de   : > { %1160 = vmatpush.bf16.msra.mxu1 %v1669_v61  ;;  %v1629_v29 = vor.u32 %v1759_v24, %v1626_v25  ;;  %s1177_s1 = scalar_lea.sflag [#allocation5], %s443_s23 }
 0x2e1   : > { %1147 = vmatpush.bf16.msra.mxu0 %v1657_v2  ;;  %s1688_s22 = sshll.u32 %s2770_s5, 1 }
 0x2e2   : > { %1161 = vmatpush.bf16.msra.mxu1 %v1661_v3  ;;  %s1775_s28 = sshll.u32 %s2771_s16, 3 }
 0x2e3   : > { %s1189_s25 = sadd.s32 %s1775_s28, %s1688_s22  ;;  %s2161_s16 = scalar_lea.hbm %s2773_s6, 128 }
 0x2e4   : > { %s1690_s26 = sshll.u32 %s1189_s25, 3 }
 0x2e5   : > { %1148 = vmatpush.bf16.msra.mxu0 %v1649_v8  ;;  %s1191_s21 = scalar_lea.hbm %s2773_s6, %s1690_s26 }
 0x2e6   : > { %1162 = vmatpush.bf16.msra.mxu1 %v1653_v9  ;;  %s1194_s27 = sshll.u32 %s1191_s21, 4  ;;  %s1195_s27 = int_to_ptr.hbm [resolvable:$true] %s1194_s27 }
 0x2e7   : > { %s2155_s4 = sshra.s32 %s1195_s27, 4  ;;  %s2156_s4 = int_to_ptr.hbm [resolvable:$true] %s2155_s4 }
 0x2e8   : > { %s2157_s15 = scalar_lea.hbm %s2156_s4, 32  ;;  %p2162_p8 = scmp.lt.s32.totalorder %s2156_s4, %s2773_s6 }
 0x2e9   : > { %1149 = vmatpush.bf16.msra.mxu0 %v1641_v14  ;;  %p2158_p4 = scmp.ne.s32.totalorder %s2156_s4, %s2157_s15  ;;  %p2163_p13 = scmp.lt.s32.totalorder %s2161_s16, %s2157_s15 }
 0x2ea   : > { %1163 = vmatpush.bf16.msra.mxu1 %v1645_v15 }
 0x2eb   : > { %p2159_p11 = pnand %p2158_p4, %p2443_p6  ;;  %p2164_p1 = por %p2163_p13, %p2162_p8 }
 0x2ed   : > { %1150 = vmatpush.bf16.msra.mxu0 %v1633_v20  ;;  %p2160_p5 = pneg %p2159_p11 }
 0x2ee   : > { %1164 = vmatpush.bf16.msra.mxu1 %v1637_v21 }
 0x2ef   : > { %p2165_p3 = pnand %p2164_p1, %p2160_p5 }
 0x2f1   : > { %1151 = vmatpush.bf16.msra.mxu0 %v1625_v26 }
 0x2f2   : > { %1165 = vmatpush.bf16.msra.mxu1 %v1629_v29 }
 0x2f4   : > { %1152 = vmatmul.bf16.vlgmr.msra.gmra.mxu0 %v1047_v30 }
 0x2f5   : > { %1166 = vmatmul.bf16.vlgmr.msra.gmra.mxu1 %v1047_v30 }
 0x371   : > { %v1153_v31 = vpop.f32.mrf.mxu0 }
 0x372   : > { %1172 = vst [vmem:[%s2587_s11] sm:$0xff] %v1153_v31  ;;  %v1167_v32 = vpop.f32.mrf.mxu1 }
 0x373   : > { %1173 = vst [vmem:[%s2587_s11 + $0x8] sm:$0xff] %v1167_v32 }
 0x379   : > { %v1155_v33 = vpop.f32.mrf.mxu0 }
 0x37a   : > { %1174 = vst [vmem:[%s2587_s11 + $0x10] sm:$0xff] %v1155_v33  ;;  %v1169_v34 = vpop.f32.mrf.mxu1 }
 0x37b   : > { %1175 = vst [vmem:[%s2587_s11 + $0x18] sm:$0xff] %v1169_v34 }
 0x37c   : > { %2168 = shalt.err (!%p2165_p3)
}
 0x37d   : > { %s2310_s23 = smov 256   ;;  %s2311_s11 = smov 512  }
 0x37e   : > { %s2312_s9 = smov 16  }
 0x37f   : > { %1796 = dma.vmem_to_hbm [thread:$0]  (%p2443_p6), %s1193_s20, 512, %s1195_s27, %s1177_s1, %s2310_s23, %s2311_s11, %s2312_s9  }
 0x380 PF: > { %s2775_s25 = sld [smem:[#allocation20_spill]]  ;;  %p1831_p7 = scmp.ge.s32.totalorder %s2299_s18, 2 }
 0x382   : > { %p1819_p9 = pnand %p1831_p7, %p2449_p10 }
 0x384   : > { %p1820_p12 = pneg %p1819_p9 }
 0x386   : > { %s1209_s30 = sand.u32 1, %s2775_s25  }
 0x387   : > { %s1210_s19 = scalar_lea.sflag [#allocation5], %s1209_s30 }
 0x388   : > { %2242 = dma.done.wait (%p1820_p12), %s1210_s19, 512  }
 0x389   : > { %2244 = vsyncadd (%p1820_p12), %s1210_s19, 4294966784  ;;  %s29_s18 = sadd.s32 1, %s2299_s18   ;;  %s2778_s27 = sld [smem:[#allocation21_spill]] }
 0x38a   : > { %p2659_p2 = scmp.ge.s32.totalorder %s29_s18, 6   ;;  %s2779_s30 = sld [smem:[#allocation22_spill]] }
 0x38b   : > { %s2780_s24 = sld [smem:[#allocation25_spill]]  ;;  %s2782_s28 = smov %s2255_s29 }
 0x38c   : > { %s2781_s16 = sld [smem:[#allocation29_spill]]  ;;  %s2783_s29 = smov %s2548_s3 }
 0x38d   : > { %s2784_s9 = smov %s2267_s10  ;;  %s2785_s10 = smov %s2538_s14 }
 0x38e   : > { %s2786_s11 = smov %s2275_s12  ;;  %s2787_s12 = smov %s2279_s13 }
 0x38f   : > { %s2788_s13 = smov %s2545_s2  ;;  %s2790_s15 = smov %s2295_s17 }
 0x390   : > { %s2791_s17 = smov %s2797_s8  ;;  %28 = sbr.rel (!%p2659_p2) target bundleno = 23 (0x17), region = 130 }
 0x391   : > { %s2789_s14 = smov %s2780_s24 }
 0x395   :  { %1216 = vsyncpa [#allocation4], 1 }
 0x396   :  { %1218 = vsyncpa [#allocation4 + $0x1], 1 }
 0x397   :  { %1219 = vsyncpa [#allocation7], 1 }
 0x398   :  { %1220 = vsyncpa [#allocation10], 1 }
 0x399   :  { %1221 = vsyncpa [#allocation13], 1 }
 0x39a   :  { %1223 = vsyncpa [#allocation13 + $0x1], 1 }
 0x39b   :  { %1224 = vsyncpa [#allocation5], 1 }
 0x39c   :  { %1226 = vsyncpa [#allocation5 + $0x1], 1 }

</bundles_post_ra>
